<compile_context>
chip_gen: v7x
topology: tpu7x:2x2x1
jax: 0.10.0
libtpu: 0.0.40
codegen_flags: <defaults>
</compile_context>

<pallas_src>
import jax
import jax.numpy as jnp
from jax.experimental import pallas as pl
from jax.experimental.pallas import tpu as pltpu


def _round_up(x, m):
    return ((x + m - 1) // m) * m


def _clip_head_batched_kernel(v_ref, t_ref, wv_ref, wt_ref, ve_ref, te_ref):
    # v_ref:  (Btile, Dv_pad)  selected CLS-token rows of this batch tile
    # t_ref:  (Btile, Dt_pad)  selected g_index-token rows of this batch tile
    # wv_ref: (Dv_pad, E)      visual projection  (constant index -> resident in VMEM)
    # wt_ref: (Dt_pad, E)      textual projection (constant index -> resident in VMEM)
    # ve_ref / te_ref: (Btile, E) float32 outputs — dense sublane/lane stores
    ve_ref[...] = jnp.dot(v_ref[...], wv_ref[...], preferred_element_type=jnp.float32)
    te_ref[...] = jnp.dot(t_ref[...], wt_ref[...], preferred_element_type=jnp.float32)


def clip_head_project(visual_feature, textual_feature, g_index, w_visual, w_textual):
    """CLIP_head projections: CLS-token visual projection + g_index-token textual projection.

    Returns (visual_embed, textual_embed), both float32 of shape (B, E)
    (equivalent to the `.float()` casts in CLIP_head.forward).
    """
    B, Sv, Dv = visual_feature.shape
    Bt, St, Dt = textual_feature.shape
    assert Bt == B
    E = w_visual.shape[1]
    assert w_visual.shape == (Dv, E) and w_textual.shape == (Dt, E)

    # --- Token selection in the wrapper (tiny: B rows each; avoids any contiguity /
    #     hidden-HBM-copy assumption on the full (B, S, D) tensors). ---
    g = jnp.clip(g_index.astype(jnp.int32), 0, St - 1)
    v_rows = visual_feature[:, 0, :]                         # (B, Dv) CLS tokens
    t_rows = textual_feature[jnp.arange(B), g, :]            # (B, Dt) gathered tokens

    # --- Pad the contraction dims to a multiple of 128 lanes (zero rows/cols contribute
    #     nothing to the dot).  No-op for real CLIP dims (multiples of 128). ---
    Dv_pad = _round_up(Dv, 128)
    Dt_pad = _round_up(Dt, 128)
    w_v, w_t = w_visual, w_textual
    if Dv_pad != Dv:
        v_rows = jnp.pad(v_rows, ((0, 0), (0, Dv_pad - Dv)))
        w_v = jnp.pad(w_visual, ((0, Dv_pad - Dv), (0, 0)))
    if Dt_pad != Dt:
        t_rows = jnp.pad(t_rows, ((0, 0), (0, Dt_pad - Dt)))
        w_t = jnp.pad(w_textual, ((0, Dt_pad - Dt), (0, 0)))

    # --- Pad B to sublane granularity (16 for bf16 packing, 8 for f32) and pick a B-tile.
    #     At large production B (>128), tile at 128 rows so the parallel grid axis lets
    #     both v7x TensorCores split batch tiles. ---
    sub = 16 if v_rows.dtype == jnp.bfloat16 else 8
    B_pad = _round_up(B, sub)
    if B_pad > 128:
        Btile = 128
        B_pad = _round_up(B_pad, Btile)
    else:
        Btile = B_pad
    if B_pad != B:
        v_rows = jnp.pad(v_rows, ((0, B_pad - B), (0, 0)))
        t_rows = jnp.pad(t_rows, ((0, B_pad - B), (0, 0)))

    grid_spec = pltpu.PrefetchScalarGridSpec(
        num_scalar_prefetch=0,
        grid=(B_pad // Btile,),
        in_specs=[
            # Dense slabs of selected tokens, tiled along the batch dim.
            pl.BlockSpec((Btile, Dv_pad), lambda i: (i, 0)),
            pl.BlockSpec((Btile, Dt_pad), lambda i: (i, 0)),
            # Projection weights: constant block index -> fetched once, resident in VMEM.
            pl.BlockSpec((Dv_pad, E), lambda i: (0, 0)),
            pl.BlockSpec((Dt_pad, E), lambda i: (0, 0)),
        ],
        out_specs=[
            # Sublane- and lane-dense (Btile, E) output blocks (unmasked stores).
            pl.BlockSpec((Btile, E), lambda i: (i, 0)),
            pl.BlockSpec((Btile, E), lambda i: (i, 0)),
        ],
    )

    visual_embed, textual_embed = pl.pallas_call(
        _clip_head_batched_kernel,
        out_shape=(
            jax.ShapeDtypeStruct((B_pad, E), jnp.float32),  # `.float()` in the torch forward
            jax.ShapeDtypeStruct((B_pad, E), jnp.float32),
        ),
        grid_spec=grid_spec,
        compiler_params=pltpu.CompilerParams(
            # Batch tiles are fully independent (no carried scratch) -> safe to mark parallel.
            dimension_semantics=("parallel",)),
    )(v_rows, t_rows, w_v, w_t)

    return visual_embed[:B], textual_embed[:B]


def clip_head_forward(visual_feature, textual_feature, g_index, w_visual, w_textual):
    # Equivalent of CLIP_head.forward up to (and including) the `.float()` casts on the
    # projected embeddings.  For best MXU efficiency on v5e (bf16-native MXU, no f32 FMA),
    # pass bf16 activations/weights; f32 accumulation + f32 outputs are kept either way.
    visual_embed, textual_embed = clip_head_project(
        visual_feature, textual_feature, g_index, w_visual, w_textual)
    # TODO(synk): RN visual branch (passthrough) and losses = loss_evaluator(...) are
    # external to the provided snippet and not implemented here.
    return visual_embed, textual_embed


if __name__ == "__main__":
    key = jax.random.PRNGKey(0)
    B, Sv, St = 4, 8, 8
    visual_size, textual_size, embed_dim = 32, 48, 256

    k1, k2, k3, k4, k5 = jax.random.split(key, 5)
    visual_feature = jax.random.normal(k1, (B, Sv, visual_size), dtype=jnp.float32)
    textual_feature = jax.random.normal(k2, (B, St, textual_size), dtype=jnp.float32)
    g_index = jax.random.randint(k3, (B,), 0, St, dtype=jnp.int32)
    # Deterministic parameter init (torch.empty is uninitialized; use CLIP-style scaled normal).
    w_visual = jax.random.normal(k4, (visual_size, embed_dim), dtype=jnp.float32) * visual_size ** -0.5
    w_textual = jax.random.normal(k5, (textual_size, embed_dim), dtype=jnp.float32) * textual_size ** -0.5

    # --- float32 path (matches torch default dtype) ---
    visual_embed, textual_embed = clip_head_forward(
        visual_feature, textual_feature, g_index, w_visual, w_textual)
    jax.block_until_ready((visual_embed, textual_embed))

    ve_ref = visual_feature[:, 0, :] @ w_visual
    te_ref = textual_feature[jnp.arange(B), g_index] @ w_textual
    assert visual_embed.shape == (B, embed_dim) and visual_embed.dtype == jnp.float32
    assert textual_embed.shape == (B, embed_dim) and textual_embed.dtype == jnp.float32
    assert jnp.allclose(visual_embed, ve_ref, atol=1e-4, rtol=1e-4)
    assert jnp.allclose(textual_embed, te_ref, atol=1e-4, rtol=1e-4)

    # --- bf16 path: MXU-native inputs, f32 accumulation / f32 outputs (the `.float()` cast) ---
    ve_bf, te_bf = clip_head_forward(
        visual_feature.astype(jnp.bfloat16), textual_feature.astype(jnp.bfloat16),
        g_index, w_visual.astype(jnp.bfloat16), w_textual.astype(jnp.bfloat16))
    jax.block_until_ready((ve_bf, te_bf))
    ve_ref_bf = (visual_feature.astype(jnp.bfloat16).astype(jnp.float32)[:, 0, :]
                 @ w_visual.astype(jnp.bfloat16).astype(jnp.float32))
    te_ref_bf = (textual_feature.astype(jnp.bfloat16).astype(jnp.float32)[jnp.arange(B), g_index]
                 @ w_textual.astype(jnp.bfloat16).astype(jnp.float32))
    assert ve_bf.dtype == jnp.float32 and te_bf.dtype == jnp.float32
    assert jnp.allclose(ve_bf, ve_ref_bf, atol=5e-2, rtol=5e-2)
    assert jnp.allclose(te_bf, te_ref_bf, atol=5e-2, rtol=5e-2)

    print("KERNEL_OK")
</pallas_src>

<mosaic_0001>
module attributes {stable_mosaic.version = 11 : i64} {
  func.func @_clip_head_batched_kernel(%arg0: i32, %arg1: memref<8x128xf32, #tpu.memory_space<vmem>>, %arg2: memref<8x128xf32, #tpu.memory_space<vmem>>, %arg3: memref<128x256xf32, #tpu.memory_space<vmem>>, %arg4: memref<128x256xf32, #tpu.memory_space<vmem>>, %arg5: memref<8x256xf32, #tpu.memory_space<vmem>>, %arg6: memref<8x256xf32, #tpu.memory_space<vmem>>) attributes {dimension_semantics = [#tpu.dimension_semantics<parallel>], iteration_bounds = array<i64: 1>, scalar_prefetch = 0 : i64, scratch_operands = 0 : i64, tpu.core_type = #tpu.core_type<tc>, window_params = [{transform_indices = @transform_0, window_bounds = array<i64: 8, 128>}, {transform_indices = @transform_1, window_bounds = array<i64: 8, 128>}, {pipeline_mode = #tpu.pipeline_mode<synchronous>, transform_indices = @transform_2, window_bounds = array<i64: 128, 256>}, {pipeline_mode = #tpu.pipeline_mode<synchronous>, transform_indices = @transform_3, window_bounds = array<i64: 128, 256>}, {transform_indices = @transform_4, window_bounds = array<i64: 8, 256>}, {transform_indices = @transform_5, window_bounds = array<i64: 8, 256>}]} {
    %c0 = arith.constant 0 : index
    %c0_0 = arith.constant 0 : index
    %0 = vector.load %arg1[%c0, %c0_0] : memref<8x128xf32, #tpu.memory_space<vmem>>, vector<8x128xf32>
    %c0_1 = arith.constant 0 : index
    %c0_2 = arith.constant 0 : index
    %1 = vector.load %arg3[%c0_1, %c0_2] : memref<128x256xf32, #tpu.memory_space<vmem>>, vector<128x256xf32>
    %cst = arith.constant dense<0.000000e+00> : vector<8x256xf32>
    %2 = tpu.matmul %0, %1, %cst {dimension_numbers = #tpu.dot_dimension_numbers<[1], [0], [0], [1], [0, 0, 1, 1], [], []>} : vector<8x128xf32>, vector<128x256xf32>, vector<8x256xf32> -> vector<8x256xf32>
    %c0_3 = arith.constant 0 : index
    %c0_4 = arith.constant 0 : index
    %3 = vector.load %arg5[%c0_3, %c0_4] : memref<8x256xf32, #tpu.memory_space<vmem>>, vector<8x256xf32>
    tpu.vector_store %arg5[%c0_3, %c0_4], %2 {strides = array<i32>} : memref<8x256xf32, #tpu.memory_space<vmem>>, vector<8x256xf32>,
    %c0_5 = arith.constant 0 : index
    %c0_6 = arith.constant 0 : index
    %4 = vector.load %arg2[%c0_5, %c0_6] : memref<8x128xf32, #tpu.memory_space<vmem>>, vector<8x128xf32>
    %c0_7 = arith.constant 0 : index
    %c0_8 = arith.constant 0 : index
    %5 = vector.load %arg4[%c0_7, %c0_8] : memref<128x256xf32, #tpu.memory_space<vmem>>, vector<128x256xf32>
    %cst_9 = arith.constant dense<0.000000e+00> : vector<8x256xf32>
    %6 = tpu.matmul %4, %5, %cst_9 {dimension_numbers = #tpu.dot_dimension_numbers<[1], [0], [0], [1], [0, 0, 1, 1], [], []>} : vector<8x128xf32>, vector<128x256xf32>, vector<8x256xf32> -> vector<8x256xf32>
    %c0_10 = arith.constant 0 : index
    %c0_11 = arith.constant 0 : index
    %7 = vector.load %arg6[%c0_10, %c0_11] : memref<8x256xf32, #tpu.memory_space<vmem>>, vector<8x256xf32>
    tpu.vector_store %arg6[%c0_10, %c0_11], %6 {strides = array<i32>} : memref<8x256xf32, #tpu.memory_space<vmem>>, vector<8x256xf32>,
    return
  }
  func.func @transform_0(%arg0: i32) -> (i32, i32) {
    %c0_i32 = arith.constant 0 : i32
    %c0_i32_0 = arith.constant 0 : i32
    return %arg0, %c0_i32 : i32, i32
  }
  func.func @transform_1(%arg0: i32) -> (i32, i32) {
    %c0_i32 = arith.constant 0 : i32
    %c0_i32_0 = arith.constant 0 : i32
    return %arg0, %c0_i32 : i32, i32
  }
  func.func @transform_2(%arg0: i32) -> (i32, i32) {
    %c0_i32 = arith.constant 0 : i32
    %c0_i32_0 = arith.constant 0 : i32
    %c0_i32_1 = arith.constant 0 : i32
    return %c0_i32, %c0_i32_0 : i32, i32
  }
  func.func @transform_3(%arg0: i32) -> (i32, i32) {
    %c0_i32 = arith.constant 0 : i32
    %c0_i32_0 = arith.constant 0 : i32
    %c0_i32_1 = arith.constant 0 : i32
    return %c0_i32, %c0_i32_0 : i32, i32
  }
  func.func @transform_4(%arg0: i32) -> (i32, i32) {
    %c0_i32 = arith.constant 0 : i32
    %c0_i32_0 = arith.constant 0 : i32
    return %arg0, %c0_i32 : i32, i32
  }
  func.func @transform_5(%arg0: i32) -> (i32, i32) {
    %c0_i32 = arith.constant 0 : i32
    %c0_i32_0 = arith.constant 0 : i32
    return %arg0, %c0_i32 : i32, i32
  }
}

</mosaic_0001>

<bundles_post_ra>
// kernel: tpu_custom_call.1
= control target key start
LH: loop header
LB: loop body
LE: loop exit
PB: predicated region body
PF: predicated region fallthrough
CT: control target
= control target key end

     0   :  { %11 = vsyncpa [#allocation3], 0  ;;  %s648_s0 = inlined_call_operand.hbm [shape: f32[8,128], index: 0, kind: input, shape index: {}]   ;;  %s649_s1 = inlined_call_operand.hbm [shape: f32[8,128], index: 1, kind: input, shape index: {}]   ;;  %s650_s2 = inlined_call_operand.hbm [shape: f32[128,256], index: 2, kind: input, shape index: {}]   ;;  %s651_s3 = inlined_call_operand.hbm [shape: f32[128,256], index: 3, kind: input, shape index: {}]   ;;  %s652_s4 = inlined_call_operand.hbm [shape: f32[8,256], index: 4, kind: output, shape index: {0}]   ;;  %s653_s5 = inlined_call_operand.hbm [shape: f32[8,256], index: 5, kind: output, shape index: {1}]  }
   0x1   :  { %12 = vsyncpa [#allocation6], 0 }
   0x2   :  { %13 = vsyncpa [#allocation9], 0 }
   0x3   :  { %14 = vsyncpa [#allocation4], 0 }
   0x4   :  { %15 = vsyncpa [#allocation12], 0  ;;  %s530_s18 = smov [#allocation5]   ;;  %s531_s20 = smov [#allocation2]  }
   0x5   :  { %s32_s19 = sshll.u32 %s530_s18, 4  ;;  %s22_s21 = sshll.u32 %s531_s20, 4  ;;  %s33_s19 = int_to_ptr.vmem [resolvable:$true] %s32_s19  ;;  %s23_s21 = int_to_ptr.vmem [resolvable:$true] %s22_s21 }
   0x6   :  { %s388_s24 = scalar_lea.hbm %s649_s1, 128 }
   0x7   :  { %p389_p0 = scmp.ne.s32.totalorder %s649_s1, %s388_s24  ;;  %p392_p1 = scmp.lt.u32.totalorder %s388_s24, %s649_s1 }
   0x9   :  { %p394_p2 = pnand %p392_p1, %p389_p0 }
   0xb   :  { %397 = shalt.err (!%p394_p2)
}
   0xc   :  { %s398_s29 = scalar_lea.vmem %s33_s19, 128  ;;  %p403_p4 = scmp.lt.s32.totalorder %s33_s19, %s33_s19 }
   0xd   :  { %p399_p3 = scmp.ne.s32.totalorder %s33_s19, %s398_s29  ;;  %p404_p5 = scmp.lt.s32.totalorder %s398_s29, %s398_s29 }
   0xf   :  { %p405_p6 = por %p404_p5, %p403_p4 }
  0x11   :  { %p406_p7 = pnand %p405_p6, %p399_p3 }
  0x13   :  { %409 = shalt.err (!%p406_p7)
}
  0x14   :  { %35 = dma.hbm_to_vmem [thread:$0]  %s649_s1, 128, %s33_s19, [#allocation6]  }
  0x15   :  { %s410_s9 = scalar_lea.hbm %s648_s0, 128 }
  0x16   :  { %p411_p8 = scmp.ne.s32.totalorder %s648_s0, %s410_s9  ;;  %p414_p9 = scmp.lt.u32.totalorder %s410_s9, %s648_s0 }
  0x18   :  { %p416_p10 = pnand %p414_p9, %p411_p8 }
  0x1a   :  { %419 = shalt.err (!%p416_p10)
}
  0x1b   :  { %s420_s14 = scalar_lea.vmem %s23_s21, 128  ;;  %p425_p12 = scmp.lt.s32.totalorder %s23_s21, %s23_s21 }
  0x1c   :  { %p421_p11 = scmp.ne.s32.totalorder %s23_s21, %s420_s14  ;;  %p426_p13 = scmp.lt.s32.totalorder %s420_s14, %s420_s14 }
  0x1e   :  { %p427_p0 = por %p426_p13, %p425_p12 }
  0x20   :  { %p428_p1 = pnand %p427_p0, %p421_p11 }
  0x22   :  { %431 = shalt.err (!%p428_p1)
}
  0x23   :  { %25 = dma.hbm_to_vmem [thread:$0]  %s648_s0, 128, %s23_s21, [#allocation3]  }
  0x24   :  { %s532_s16 = smov [#allocation7]   ;;  %s432_s20 = scalar_lea.hbm %s650_s2, 4096 }
  0x25   :  { %s41_s17 = sshll.u32 %s532_s16, 4  ;;  %p433_p2 = scmp.ne.s32.totalorder %s650_s2, %s432_s20  ;;  %s42_s17 = int_to_ptr.vmem [resolvable:$true] %s41_s17 }
  0x26   :  { %p436_p3 = scmp.lt.u32.totalorder %s432_s20, %s650_s2 }
  0x28   :  { %p438_p4 = pnand %p436_p3, %p433_p2 }
  0x2a   :  { %441 = shalt.err (!%p438_p4)
}
  0x2b   :  { %s442_s26 = scalar_lea.vmem %s42_s17, 4096  ;;  %p447_p6 = scmp.lt.s32.totalorder %s42_s17, %s42_s17 }
  0x2c   :  { %p443_p5 = scmp.ne.s32.totalorder %s42_s17, %s442_s26  ;;  %p448_p7 = scmp.lt.s32.totalorder %s442_s26, %s442_s26 }
  0x2e   :  { %p449_p8 = por %p448_p7, %p447_p6 }
  0x30   :  { %p450_p9 = pnand %p449_p8, %p443_p5 }
  0x32   :  { %453 = shalt.err (!%p450_p9)
}
  0x33   :  { %s533_s0 = smov 256   ;;  %s534_s21 = smov 16  }
  0x34   :  { %47 = dma.hbm_to_vmem [thread:$0]  %s650_s2, 4096, %s42_s17, [#allocation6], %s533_s0, %s533_s0, %s534_s21  }
  0x35   :  { %s535_s29 = smov [#allocation8]   ;;  %s454_s8 = scalar_lea.hbm %s651_s3, 4096 }
  0x36   :  { %s53_s30 = sshll.u32 %s535_s29, 4  ;;  %p455_p10 = scmp.ne.s32.totalorder %s651_s3, %s454_s8  ;;  %s54_s30 = int_to_ptr.vmem [resolvable:$true] %s53_s30 }
  0x37   :  { %p458_p11 = scmp.lt.u32.totalorder %s454_s8, %s651_s3 }
  0x39   :  { %p460_p12 = pnand %p458_p11, %p455_p10 }
  0x3b   :  { %463 = shalt.err (!%p460_p12)
}
  0x3c   :  { %s464_s13 = scalar_lea.vmem %s54_s30, 4096  ;;  %p469_p0 = scmp.lt.s32.totalorder %s54_s30, %s54_s30 }
  0x3d   :  { %p465_p13 = scmp.ne.s32.totalorder %s54_s30, %s464_s13  ;;  %p470_p1 = scmp.lt.s32.totalorder %s464_s13, %s464_s13 }
  0x3f   :  { %p471_p2 = por %p470_p1, %p469_p0 }
  0x41   :  { %p472_p3 = pnand %p471_p2, %p465_p13 }
  0x43   :  { %475 = shalt.err (!%p472_p3)
}
  0x44   :  { %59 = dma.hbm_to_vmem [thread:$0]  %s651_s3, 4096, %s54_s30, [#allocation9], %s533_s0, %s533_s0, %s534_s21  }
  0x45   :  { %520 = dma.done.wait [#allocation3], 128  }
  0x46   :  { %521 = vsyncadd [#allocation3], 4294967168 }
  0x47   :  { %522 = dma.done.wait [#allocation6], 4224  }
  0x48   :  { %523 = vsyncadd [#allocation6], 4294963072 }
  0x49   :  { %524 = dma.done.wait [#allocation9], 4096  }
  0x4a   :  { %525 = vsyncadd [#allocation9], 4294963200  ;;  %v536_v0 = vmov 0.0   ;;  %v74_v1 = vld [vmem:[#allocation7 + $0x8] sm:$0xff]  ;;  %v76_v2 = vld [vmem:[#allocation7 + $0x18] sm:$0xff]  ;;  %s537_s3 = smov [#allocation10]  }
  0x4b   :  { %169 = vmatprep.mubr.f32.mxu0 %v536_v0  ;;  %275 = vmatprep.mubr.f32.mxu1 %v536_v0  ;;  %v180_v3 = vld [vmem:[#allocation8 + $0x8] sm:$0xff]  ;;  %v315_v4 = vpack.c.bf16 %v76_v2, %v74_v1  ;;  %v182_v5 = vld [vmem:[#allocation8 + $0x18] sm:$0xff]  ;;  %v73_v6 = vld [vmem:[#allocation7] sm:$0xff]  ;;  %s290_s1 = sshll.u32 %s537_s3, 4  ;;  %s538_s15 = smov [#allocation11]   ;;  %s291_s1 = int_to_ptr.vmem [resolvable:$true] %s290_s1 }
  0x4c   :  { %v75_v7 = vld [vmem:[#allocation7 + $0x10] sm:$0xff]  ;;  %v347_v8 = vpack.c.bf16 %v182_v5, %v180_v3  ;;  %v179_v10 = vld [vmem:[#allocation8] sm:$0xff]  ;;  %v78_v12 = vld [vmem:[#allocation7 + $0x28] sm:$0xff]  ;;  %s300_s16 = sshll.u32 %s538_s15, 4  ;;  %s476_s17 = scalar_lea.vmem %s291_s1, 256  ;;  %s617_s16 = int_to_ptr.vmem [resolvable:$true] %s300_s16 }
  0x4d   :  { %v317_v9 = vpack.c.bf16 %v75_v7, %v73_v6  ;;  %v181_v11 = vld [vmem:[#allocation8 + $0x10] sm:$0xff]  ;;  %316 = vmatprep.subr.bf16.mxu0 %v315_v4  ;;  %v80_v14 = vld [vmem:[#allocation7 + $0x38] sm:$0xff]  ;;  %v184_v15 = vld [vmem:[#allocation8 + $0x28] sm:$0xff]  ;;  %p477_p4 = scmp.ne.s32.totalorder %s291_s1, %s476_s17  ;;  %p481_p5 = scmp.lt.s32.totalorder %s291_s1, %s291_s1 }
  0x4e   :  { %v349_v13 = vpack.c.bf16 %v181_v11, %v179_v10  ;;  %v186_v16 = vld [vmem:[#allocation8 + $0x38] sm:$0xff]  ;;  %348 = vmatprep.subr.bf16.mxu1 %v347_v8  ;;  %v319_v17 = vpack.c.bf16 %v80_v14, %v78_v12  ;;  %v77_v19 = vld [vmem:[#allocation7 + $0x20] sm:$0xff]  ;;  %v79_v20 = vld [vmem:[#allocation7 + $0x30] sm:$0xff]  ;;  %p482_p6 = scmp.lt.s32.totalorder %s476_s17, %s476_s17 }
  0x4f   :  { %318 = vmatpush1.bf16.msra.mxu0 %v317_v9  ;;  %v351_v18 = vpack.c.bf16 %v186_v16, %v184_v15  ;;  %v183_v21 = vld [vmem:[#allocation8 + $0x20] sm:$0xff]  ;;  %v321_v22 = vpack.c.bf16 %v79_v20, %v77_v19  ;;  %v185_v23 = vld [vmem:[#allocation8 + $0x30] sm:$0xff]  ;;  %v82_v24 = vld [vmem:[#allocation7 + $0x48] sm:$0xff] }
  0x50   :  { %350 = vmatpush1.bf16.msra.mxu1 %v349_v13  ;;  %v84_v25 = vld [vmem:[#allocation7 + $0x58] sm:$0xff]  ;;  %320 = vmatprep.subr.bf16.mxu0 %v319_v17  ;;  %v353_v26 = vpack.c.bf16 %v185_v23, %v183_v21  ;;  %v188_v28 = vld [vmem:[#allocation8 + $0x48] sm:$0xff]  ;;  %v81_v30 = vld [vmem:[#allocation7 + $0x40] sm:$0xff]  ;;  %p483_p7 = por %p482_p6, %p481_p5 }
  0x51   :  { %352 = vmatprep.subr.bf16.mxu1 %v351_v18  ;;  %v323_v27 = vpack.c.bf16 %v84_v25, %v82_v24  ;;  %v190_v29 = vld [vmem:[#allocation8 + $0x58] sm:$0xff]  ;;  %v83_v32 = vld [vmem:[#allocation7 + $0x50] sm:$0xff]  ;;  %v187_v33 = vld [vmem:[#allocation8 + $0x40] sm:$0xff] }
  0x52   :  { %v355_v31 = vpack.c.bf16 %v190_v29, %v188_v28  ;;  %v189_v34 = vld [vmem:[#allocation8 + $0x50] sm:$0xff]  ;;  %v325_v35 = vpack.c.bf16 %v83_v32, %v81_v30  ;;  %v86_v36 = vld [vmem:[#allocation7 + $0x68] sm:$0xff]  ;;  %v88_v37 = vld [vmem:[#allocation7 + $0x78] sm:$0xff]  ;;  %p484_p8 = pnand %p483_p7, %p477_p4 }
  0x53   :  { %322 = vmatpush1.bf16.msra.mxu0 %v321_v22  ;;  %v192_v38 = vld [vmem:[#allocation8 + $0x68] sm:$0xff]  ;;  %v357_v39 = vpack.c.bf16 %v189_v34, %v187_v33  ;;  %v327_v40 = vpack.c.bf16 %v88_v37, %v86_v36  ;;  %v194_v41 = vld [vmem:[#allocation8 + $0x78] sm:$0xff]  ;;  %v85_v42 = vld [vmem:[#allocation7 + $0x60] sm:$0xff] }
  0x54   :  { %354 = vmatpush1.bf16.msra.mxu1 %v353_v26  ;;  %324 = vmatprep.subr.bf16.mxu0 %v323_v27  ;;  %v87_v43 = vld [vmem:[#allocation7 + $0x70] sm:$0xff]  ;;  %v359_v44 = vpack.c.bf16 %v194_v41, %v192_v38  ;;  %v191_v45 = vld [vmem:[#allocation8 + $0x60] sm:$0xff]  ;;  %v90_v47 = vld [vmem:[#allocation7 + $0x88] sm:$0xff] }
  0x55   :  { %356 = vmatprep.subr.bf16.mxu1 %v355_v31  ;;  %v193_v46 = vld [vmem:[#allocation8 + $0x70] sm:$0xff]  ;;  %v92_v48 = vld [vmem:[#allocation7 + $0x98] sm:$0xff]  ;;  %v196_v49 = vld [vmem:[#allocation8 + $0x88] sm:$0xff]  ;;  %v329_v51 = vpack.c.bf16 %v87_v43, %v85_v42 }
  0x56   :  { %v198_v50 = vld [vmem:[#allocation8 + $0x98] sm:$0xff]  ;;  %v361_v52 = vpack.c.bf16 %v193_v46, %v191_v45  ;;  %v331_v53 = vpack.c.bf16 %v92_v48, %v90_v47  ;;  %v89_v54 = vld [vmem:[#allocation7 + $0x80] sm:$0xff]  ;;  %v91_v55 = vld [vmem:[#allocation7 + $0x90] sm:$0xff] }
  0x57   :  { %326 = vmatpush1.bf16.msra.mxu0 %v325_v35  ;;  %v195_v56 = vld [vmem:[#allocation8 + $0x80] sm:$0xff]  ;;  %v363_v57 = vpack.c.bf16 %v198_v50, %v196_v49  ;;  %v197_v58 = vld [vmem:[#allocation8 + $0x90] sm:$0xff]  ;;  %v94_v59 = vld [vmem:[#allocation7 + $0xa8] sm:$0xff]  ;;  %v333_v63 = vpack.c.bf16 %v91_v55, %v89_v54 }
  0x58   :  { %358 = vmatpush1.bf16.msra.mxu1 %v357_v39  ;;  %328 = vmatprep.subr.bf16.mxu0 %v327_v40  ;;  %v96_v60 = vld [vmem:[#allocation7 + $0xb8] sm:$0xff]  ;;  %v200_v61 = vld [vmem:[#allocation8 + $0xa8] sm:$0xff]  ;;  %v365_v0 = vpack.c.bf16 %v197_v58, %v195_v56  ;;  %v93_v2 = vld [vmem:[#allocation7 + $0xa0] sm:$0xff] }
  0x59   :  { %360 = vmatprep.subr.bf16.mxu1 %v359_v44  ;;  %v202_v62 = vld [vmem:[#allocation8 + $0xb8] sm:$0xff]  ;;  %v335_v1 = vpack.c.bf16 %v96_v60, %v94_v59  ;;  %v95_v3 = vld [vmem:[#allocation7 + $0xb0] sm:$0xff]  ;;  %v199_v4 = vld [vmem:[#allocation8 + $0xa0] sm:$0xff] }
  0x5a   :  { %v367_v5 = vpack.c.bf16 %v202_v62, %v200_v61  ;;  %v201_v6 = vld [vmem:[#allocation8 + $0xb0] sm:$0xff]  ;;  %v98_v7 = vld [vmem:[#allocation7 + $0xc8] sm:$0xff]  ;;  %v100_v8 = vld [vmem:[#allocation7 + $0xd8] sm:$0xff]  ;;  %v337_v11 = vpack.c.bf16 %v95_v3, %v93_v2 }
  0x5b   :  { %330 = vmatpush1.bf16.msra.mxu0 %v329_v51  ;;  %v204_v9 = vld [vmem:[#allocation8 + $0xc8] sm:$0xff]  ;;  %v206_v10 = vld [vmem:[#allocation8 + $0xd8] sm:$0xff]  ;;  %v369_v12 = vpack.c.bf16 %v201_v6, %v199_v4  ;;  %v339_v13 = vpack.c.bf16 %v100_v8, %v98_v7  ;;  %v97_v14 = vld [vmem:[#allocation7 + $0xc0] sm:$0xff] }
  0x5c   :  { %362 = vmatpush1.bf16.msra.mxu1 %v361_v52  ;;  %332 = vmatprep.subr.bf16.mxu0 %v331_v53  ;;  %v99_v15 = vld [vmem:[#allocation7 + $0xd0] sm:$0xff]  ;;  %v203_v16 = vld [vmem:[#allocation8 + $0xc0] sm:$0xff]  ;;  %v371_v17 = vpack.c.bf16 %v206_v10, %v204_v9  ;;  %v102_v19 = vld [vmem:[#allocation7 + $0xe8] sm:$0xff] }
  0x5d   :  { %364 = vmatprep.subr.bf16.mxu1 %v363_v57  ;;  %v205_v18 = vld [vmem:[#allocation8 + $0xd0] sm:$0xff]  ;;  %v104_v20 = vld [vmem:[#allocation7 + $0xf8] sm:$0xff]  ;;  %v208_v21 = vld [vmem:[#allocation8 + $0xe8] sm:$0xff]  ;;  %v341_v23 = vpack.c.bf16 %v99_v15, %v97_v14 }
  0x5e   :  { %v210_v22 = vld [vmem:[#allocation8 + $0xf8] sm:$0xff]  ;;  %v373_v24 = vpack.c.bf16 %v205_v18, %v203_v16  ;;  %v343_v25 = vpack.c.bf16 %v104_v20, %v102_v19  ;;  %v101_v26 = vld [vmem:[#allocation7 + $0xe0] sm:$0xff]  ;;  %v103_v27 = vld [vmem:[#allocation7 + $0xf0] sm:$0xff] }
  0x5f   :  { %334 = vmatpush1.bf16.msra.mxu0 %v333_v63  ;;  %v375_v28 = vpack.c.bf16 %v210_v22, %v208_v21  ;;  %v207_v29 = vld [vmem:[#allocation8 + $0xe0] sm:$0xff]  ;;  %v209_v30 = vld [vmem:[#allocation8 + $0xf0] sm:$0xff]  ;;  %v345_v31 = vpack.c.bf16 %v103_v27, %v101_v26  ;;  %v178_v34 = vld [vmem:[#allocation5] sm:$0xff] }
  0x60   :  { %366 = vmatpush1.bf16.msra.mxu1 %v365_v0  ;;  %336 = vmatprep.subr.bf16.mxu0 %v335_v1  ;;  %v377_v32 = vpack.c.bf16 %v209_v30, %v207_v29  ;;  %v72_v33 = vld [vmem:[#allocation2] sm:$0xff] }
  0x61   :  { %368 = vmatprep.subr.bf16.mxu1 %v367_v5 }
  0x63   :  { %338 = vmatpush1.bf16.msra.mxu0 %v337_v11 }
  0x64   :  { %370 = vmatpush1.bf16.msra.mxu1 %v369_v12  ;;  %340 = vmatprep.subr.bf16.mxu0 %v339_v13 }
  0x65   :  { %372 = vmatprep.subr.bf16.mxu1 %v371_v17 }
  0x67   :  { %342 = vmatpush1.bf16.msra.mxu0 %v341_v23 }
  0x68   :  { %374 = vmatpush1.bf16.msra.mxu1 %v373_v24  ;;  %344 = vmatprep.subr.bf16.mxu0 %v343_v25 }
  0x69   :  { %376 = vmatprep.subr.bf16.mxu1 %v375_v28 }
  0x6b   :  { %346 = vmatpush1.bf16.msra.mxu0 %v345_v31 }
  0x6c   :  { %378 = vmatpush1.bf16.msra.mxu1 %v377_v32 }
  0x6e   :  { %170 = vmatmul.mubr.f32.vlgmr.msra.gmra.mrb[0].mxu0 %v72_v33 }
  0x6f   :  { %276 = vmatmul.mubr.f32.vlgmr.msra.gmra.mrb[0].mxu1 %v178_v34 }
 0x141   :  { %v171_v35 = vpop.f32.mrb[0].mxu0 }
 0x142   :  { %176 = vst [vmem:[#allocation10] sm:$0xff] %v171_v35  ;;  %v277_v36 = vpop.f32.mrb[0].mxu1  ;;  %v173_v37 = vpop.f32.mrb[1].mxu0 }
 0x143   :  { %282 = vst [vmem:[#allocation11] sm:$0xff] %v277_v36  ;;  %177 = vst [vmem:[#allocation10 + $0x8] sm:$0xff] %v173_v37  ;;  %v279_v38 = vpop.f32.mrb[1].mxu1 }
 0x144   :  { %283 = vst [vmem:[#allocation11 + $0x8] sm:$0xff] %v279_v38 }
 0x145   :  { %487 = shalt.err (!%p484_p8)
}
 0x146   :  { %s488_s20 = scalar_lea.hbm %s652_s4, 256 }
 0x147   :  { %p489_p9 = scmp.ne.s32.totalorder %s652_s4, %s488_s20  ;;  %p492_p10 = scmp.lt.u32.totalorder %s488_s20, %s652_s4 }
 0x149   :  { %p494_p11 = pnand %p492_p10, %p489_p9 }
 0x14b   :  { %497 = shalt.err (!%p494_p11)
}
 0x14c   :  { %293 = dma.vmem_to_hbm [thread:$0]  %s291_s1, 256, %s652_s4, [#allocation4]  }
 0x14d   :  { %s498_s21 = scalar_lea.vmem %s617_s16, 256  ;;  %p503_p13 = scmp.lt.s32.totalorder %s617_s16, %s617_s16 }
 0x14e   :  { %p499_p12 = scmp.ne.s32.totalorder %s617_s16, %s498_s21  ;;  %p504_p0 = scmp.lt.s32.totalorder %s498_s21, %s498_s21 }
 0x150   :  { %p505_p1 = por %p504_p0, %p503_p13 }
 0x152   :  { %p506_p2 = pnand %p505_p1, %p499_p12 }
 0x154   :  { %509 = shalt.err (!%p506_p2)
}
 0x155   :  { %s510_s29 = scalar_lea.hbm %s653_s5, 256 }
 0x156   :  { %p511_p3 = scmp.ne.s32.totalorder %s653_s5, %s510_s29  ;;  %p514_p4 = scmp.lt.u32.totalorder %s510_s29, %s653_s5 }
 0x158   :  { %p516_p5 = pnand %p514_p4, %p511_p3 }
 0x15a   :  { %519 = shalt.err (!%p516_p5)
}
 0x15b   :  { %303 = dma.vmem_to_hbm [thread:$0]  %s617_s16, 256, %s653_s5, [#allocation12]  }
 0x15c   :  { %526 = dma.done.wait [#allocation4], 256  }
 0x15d   :  { %527 = vsyncadd [#allocation4], 4294967040 }
 0x15e   :  { %528 = dma.done.wait [#allocation12], 256  }
 0x15f   :  { %529 = vsyncadd [#allocation12], 4294967040 }
 0x160   :  { %310 = vsyncpa [#allocation3], 1 }
 0x161   :  { %311 = vsyncpa [#allocation6], 1 }
 0x162   :  { %312 = vsyncpa [#allocation9], 1 }
 0x163   :  { %313 = vsyncpa [#allocation4], 1 }
 0x164   :  { %314 = vsyncpa [#allocation12], 1 }

</bundles_post_ra>
